<compile_context>
chip_gen: v7x
topology: tpu7x:2x2x1
jax: 0.10.0
libtpu: 0.0.40
codegen_flags: <defaults>
</compile_context>

<pallas_src>
import jax
import jax.numpy as jnp
from jax.experimental import pallas as pl
from jax.experimental.pallas import tpu as pltpu


def _reorder_ifgo_to_ifog(w):
    """PyTorch LSTM packs gates as [i, f, g, o] along the leading 4H axis.
    Reorder to [i, f, o, g] so the three sigmoid gates are contiguous."""
    i, f, g, o = jnp.split(w, 4, axis=0)
    return jnp.concatenate([i, f, o, g], axis=0)


def lstm_seq_kernel(x_ref, wih_ref, whh_ref, b_ref, out_ref):
    T, B, _ = x_ref.shape          # (T, B, I) with I == 1
    H = whh_ref.shape[0]           # whh_ref is (H, 4H)

    # Hoist weight loads / bias broadcast out of the unrolled time loop.
    w_row = wih_ref[...]                               # (1, 4H)  (input_size == 1)
    whh = whh_ref[...]                                 # (H, 4H)
    bias = jnp.broadcast_to(b_ref[...], (B, 4 * H))    # (B, 4H), broadcast once

    h = jnp.zeros((B, H), jnp.float32)
    c = jnp.zeros((B, H), jnp.float32)

    # T is tiny and static -> fully unrolled loop, single kernel invocation.
    for t in range(T):
        x_t = x_ref[t]                                 # (B, 1)
        # input contribution = rank-1 broadcast multiply on the VPU (no MXU op);
        # the only MXU matmul per step is h @ W_hh^T.
        gates = (x_t * w_row + bias
                 + jnp.dot(h, whh, preferred_element_type=jnp.float32))   # (B, 4H)

        # gate order after wrapper reorder: [i | f | o | g]
        sig = jax.nn.sigmoid(gates[:, :3 * H])         # one contiguous EUP dispatch
        i_g = sig[:, 0:H]
        f_g = sig[:, H:2 * H]
        o_g = sig[:, 2 * H:3 * H]
        g_g = jnp.tanh(gates[:, 3 * H:])

        c = f_g * c + i_g * g_g
        h = o_g * jnp.tanh(c)

        # out[:, -1, :] in the PyTorch module == last batch element's hidden state
        # at this timestep; store the (1, H) row, fc is done in the wrapper.
        out_ref[pl.ds(t, 1), :] = h[B - 1:B, :]


def simple_lstm_forward(x, params):
    """x: (T, B, I) float32. Returns (T, 1) float32 (matches PyTorch module output)."""
    T, B, I = x.shape
    H = params["w_hh"].shape[1]    # w_hh is (4H, H)

    # Reorder gates [i,f,g,o] -> [i,f,o,g], combine biases, pre-transpose weights.
    wih_t = _reorder_ifgo_to_ifog(params["w_ih"]).T                       # (I, 4H) = (1, 4H)
    whh_t = _reorder_ifgo_to_ifog(params["w_hh"]).T                       # (H, 4H)
    bias = _reorder_ifgo_to_ifog(params["b_ih"] + params["b_hh"]).reshape(1, 4 * H)

    hs = pl.pallas_call(
        lstm_seq_kernel,
        out_shape=jax.ShapeDtypeStruct((T, H), jnp.float32),
        grid=(1,),
        in_specs=[
            pl.BlockSpec((T, B, I), lambda i: (0, 0, 0)),   # full x in VMEM
            pl.BlockSpec((I, 4 * H), lambda i: (0, 0)),     # W_ih^T (row)
            pl.BlockSpec((H, 4 * H), lambda i: (0, 0)),     # W_hh^T
            pl.BlockSpec((1, 4 * H), lambda i: (0, 0)),     # b_ih + b_hh
        ],
        out_specs=pl.BlockSpec((T, H), lambda i: (0, 0)),   # single lane-dense block
        compiler_params=pltpu.CompilerParams(
            dimension_semantics=("arbitrary",)),
    )(x, wih_t, whh_t, bias)

    # fc projection hoisted out of the serial recurrence (tiny (T,H)@(H,1) in XLA).
    return hs @ params["fc_w"].T + params["fc_b"]


def ref_forward(x, params):
    """Pure-JAX reference mirroring the PyTorch module's semantics."""
    T, B, I = x.shape
    H = params["w_hh"].shape[1]
    h = jnp.zeros((B, H), jnp.float32)
    c = jnp.zeros((B, H), jnp.float32)
    hs = []
    for t in range(T):
        gates = (x[t] @ params["w_ih"].T + params["b_ih"]
                 + h @ params["w_hh"].T + params["b_hh"])
        i = jax.nn.sigmoid(gates[:, 0:H])
        f = jax.nn.sigmoid(gates[:, H:2 * H])
        g = jnp.tanh(gates[:, 2 * H:3 * H])
        o = jax.nn.sigmoid(gates[:, 3 * H:4 * H])
        c = f * c + i * g
        h = o * jnp.tanh(c)
        hs.append(h)
    out_all = jnp.stack(hs, axis=0)        # (T, B, H)
    last = out_all[:, -1, :]               # (T, H) -- last batch element per timestep
    return last @ params["fc_w"].T + params["fc_b"]   # (T, 1)


def init_params(key, input_size, hidden_size):
    k = 1.0 / jnp.sqrt(jnp.float32(hidden_size))
    keys = jax.random.split(key, 6)
    u = lambda kk, shape: jax.random.uniform(kk, shape, jnp.float32, -k, k)
    return {
        "w_ih": u(keys[0], (4 * hidden_size, input_size)),
        "w_hh": u(keys[1], (4 * hidden_size, hidden_size)),
        "b_ih": u(keys[2], (4 * hidden_size,)),
        "b_hh": u(keys[3], (4 * hidden_size,)),
        "fc_w": u(keys[4], (1, hidden_size)),
        "fc_b": u(keys[5], (1,)),
    }


if __name__ == "__main__":
    T, B, I, H = 8, 2, 1, 64   # seq=8, batch=2, input_size=1, hidden_size=64

    key = jax.random.PRNGKey(0)
    pkey, xkey = jax.random.split(key)
    params = init_params(pkey, I, H)
    x = jax.random.normal(xkey, (T, B, I), jnp.float32)

    out = jax.block_until_ready(simple_lstm_forward(x, params))
    ref = jax.block_until_ready(ref_forward(x, params))

    assert out.shape == (T, 1), out.shape
    assert jnp.allclose(out, ref, atol=2e-4, rtol=2e-4), (out, ref)

    print("KERNEL_OK")
</pallas_src>

<mosaic_0001>
module attributes {stable_mosaic.version = 11 : i64} {
  func.func @lstm_seq_kernel(%arg0: i32, %arg1: memref<8x2x1xf32, #tpu.memory_space<vmem>>, %arg2: memref<1x256xf32, #tpu.memory_space<vmem>>, %arg3: memref<64x256xf32, #tpu.memory_space<vmem>>, %arg4: memref<1x256xf32, #tpu.memory_space<vmem>>, %arg5: memref<8x64xf32, #tpu.memory_space<vmem>>) attributes {dimension_semantics = [#tpu.dimension_semantics<arbitrary>], iteration_bounds = array<i64: 1>, scalar_prefetch = 0 : i64, scratch_operands = 0 : i64, tpu.core_type = #tpu.core_type<tc>, window_params = [{pipeline_mode = #tpu.pipeline_mode<synchronous>, transform_indices = @transform_0, window_bounds = array<i64: 8, 2, 1>}, {pipeline_mode = #tpu.pipeline_mode<synchronous>, transform_indices = @transform_1, window_bounds = array<i64: 1, 256>}, {pipeline_mode = #tpu.pipeline_mode<synchronous>, transform_indices = @transform_2, window_bounds = array<i64: 64, 256>}, {pipeline_mode = #tpu.pipeline_mode<synchronous>, transform_indices = @transform_3, window_bounds = array<i64: 1, 256>}, {pipeline_mode = #tpu.pipeline_mode<synchronous>, transform_indices = @transform_4, window_bounds = array<i64: 8, 64>}]} {
    %c0 = arith.constant 0 : index
    %c0_0 = arith.constant 0 : index
    %0 = vector.load %arg2[%c0, %c0_0] : memref<1x256xf32, #tpu.memory_space<vmem>>, vector<1x256xf32>
    %c0_1 = arith.constant 0 : index
    %c0_2 = arith.constant 0 : index
    %1 = vector.load %arg3[%c0_1, %c0_2] : memref<64x256xf32, #tpu.memory_space<vmem>>, vector<64x256xf32>
    %c0_3 = arith.constant 0 : index
    %c0_4 = arith.constant 0 : index
    %2 = vector.load %arg4[%c0_3, %c0_4] : memref<1x256xf32, #tpu.memory_space<vmem>>, vector<1x256xf32>
    %3 = vector.shape_cast %2 : vector<1x256xf32> to vector<1x256xf32>
    %4 = vector.broadcast %3 : vector<1x256xf32> to vector<2x256xf32>
    %cst = arith.constant 0.000000e+00 : f32
    %5 = vector.broadcast %cst : f32 to vector<2x64xf32>
    %cst_5 = arith.constant 0.000000e+00 : f32
    %6 = vector.broadcast %cst_5 : f32 to vector<2x64xf32>
    %c0_6 = arith.constant 0 : index
    %c0_7 = arith.constant 0 : index
    %c0_8 = arith.constant 0 : index
    %7 = vector.load %arg1[%c0_6, %c0_7, %c0_8] : memref<8x2x1xf32, #tpu.memory_space<vmem>>, vector<1x2x1xf32>
    %8 = vector.shape_cast %7 : vector<1x2x1xf32> to vector<2x1xf32>
    %9 = vector.broadcast %8 : vector<2x1xf32> to vector<2x256xf32>
    %10 = vector.broadcast %0 : vector<1x256xf32> to vector<2x256xf32>
    %11 = arith.mulf %9, %10 : vector<2x256xf32>
    %12 = arith.addf %11, %4 : vector<2x256xf32>
    %cst_9 = arith.constant dense<0.000000e+00> : vector<2x256xf32>
    %13 = tpu.matmul %5, %1, %cst_9 {dimension_numbers = #tpu.dot_dimension_numbers<[1], [0], [0], [1], [0, 0, 1, 1], [], []>} : vector<2x64xf32>, vector<64x256xf32>, vector<2x256xf32> -> vector<2x256xf32>
    %14 = arith.addf %12, %13 : vector<2x256xf32>
    %15 = vector.extract_strided_slice %14 {offsets = [0, 0], sizes = [2, 192], strides = [1, 1]} : vector<2x256xf32> to vector<2x192xf32>
    %16 = arith.negf %15 : vector<2x192xf32>
    %17 = math.exp %16 : vector<2x192xf32>
    %cst_10 = arith.constant 1.000000e+00 : f32
    %18 = vector.broadcast %cst_10 : f32 to vector<2x192xf32>
    %19 = arith.addf %18, %17 : vector<2x192xf32>
    %20 = arith.divf %18, %19 : vector<2x192xf32>
    %21 = vector.extract_strided_slice %20 {offsets = [0, 0], sizes = [2, 64], strides = [1, 1]} : vector<2x192xf32> to vector<2x64xf32>
    %22 = vector.extract_strided_slice %20 {offsets = [0, 64], sizes = [2, 64], strides = [1, 1]} : vector<2x192xf32> to vector<2x64xf32>
    %23 = vector.extract_strided_slice %20 {offsets = [0, 128], sizes = [2, 64], strides = [1, 1]} : vector<2x192xf32> to vector<2x64xf32>
    %24 = vector.extract_strided_slice %14 {offsets = [0, 192], sizes = [2, 64], strides = [1, 1]} : vector<2x256xf32> to vector<2x64xf32>
    %25 = math.tanh %24 : vector<2x64xf32>
    %26 = arith.mulf %22, %6 : vector<2x64xf32>
    %27 = arith.mulf %21, %25 : vector<2x64xf32>
    %28 = arith.addf %26, %27 : vector<2x64xf32>
    %29 = math.tanh %28 : vector<2x64xf32>
    %30 = arith.mulf %23, %29 : vector<2x64xf32>
    %31 = vector.extract_strided_slice %30 {offsets = [1, 0], sizes = [1, 64], strides = [1, 1]} : vector<2x64xf32> to vector<1x64xf32>
    %c0_11 = arith.constant 0 : index
    %c0_12 = arith.constant 0 : index
    %32 = vector.load %arg5[%c0_11, %c0_12] : memref<8x64xf32, #tpu.memory_space<vmem>>, vector<1x64xf32>
    tpu.vector_store %arg5[%c0_11, %c0_12], %31 {strides = array<i32>} : memref<8x64xf32, #tpu.memory_space<vmem>>, vector<1x64xf32>,
    %c1 = arith.constant 1 : index
    %c0_13 = arith.constant 0 : index
    %c0_14 = arith.constant 0 : index
    %33 = vector.load %arg1[%c1, %c0_13, %c0_14] : memref<8x2x1xf32, #tpu.memory_space<vmem>>, vector<1x2x1xf32>
    %34 = vector.shape_cast %33 : vector<1x2x1xf32> to vector<2x1xf32>
    %35 = vector.broadcast %34 : vector<2x1xf32> to vector<2x256xf32>
    %36 = vector.broadcast %0 : vector<1x256xf32> to vector<2x256xf32>
    %37 = arith.mulf %35, %36 : vector<2x256xf32>
    %38 = arith.addf %37, %4 : vector<2x256xf32>
    %cst_15 = arith.constant dense<0.000000e+00> : vector<2x256xf32>
    %39 = tpu.matmul %30, %1, %cst_15 {dimension_numbers = #tpu.dot_dimension_numbers<[1], [0], [0], [1], [0, 0, 1, 1], [], []>} : vector<2x64xf32>, vector<64x256xf32>, vector<2x256xf32> -> vector<2x256xf32>
    %40 = arith.addf %38, %39 : vector<2x256xf32>
    %41 = vector.extract_strided_slice %40 {offsets = [0, 0], sizes = [2, 192], strides = [1, 1]} : vector<2x256xf32> to vector<2x192xf32>
    %42 = arith.negf %41 : vector<2x192xf32>
    %43 = math.exp %42 : vector<2x192xf32>
    %cst_16 = arith.constant 1.000000e+00 : f32
    %44 = vector.broadcast %cst_16 : f32 to vector<2x192xf32>
    %45 = arith.addf %44, %43 : vector<2x192xf32>
    %46 = arith.divf %44, %45 : vector<2x192xf32>
    %47 = vector.extract_strided_slice %46 {offsets = [0, 0], sizes = [2, 64], strides = [1, 1]} : vector<2x192xf32> to vector<2x64xf32>
    %48 = vector.extract_strided_slice %46 {offsets = [0, 64], sizes = [2, 64], strides = [1, 1]} : vector<2x192xf32> to vector<2x64xf32>
    %49 = vector.extract_strided_slice %46 {offsets = [0, 128], sizes = [2, 64], strides = [1, 1]} : vector<2x192xf32> to vector<2x64xf32>
    %50 = vector.extract_strided_slice %40 {offsets = [0, 192], sizes = [2, 64], strides = [1, 1]} : vector<2x256xf32> to vector<2x64xf32>
    %51 = math.tanh %50 : vector<2x64xf32>
    %52 = arith.mulf %48, %28 : vector<2x64xf32>
    %53 = arith.mulf %47, %51 : vector<2x64xf32>
    %54 = arith.addf %52, %53 : vector<2x64xf32>
    %55 = math.tanh %54 : vector<2x64xf32>
    %56 = arith.mulf %49, %55 : vector<2x64xf32>
    %57 = vector.extract_strided_slice %56 {offsets = [1, 0], sizes = [1, 64], strides = [1, 1]} : vector<2x64xf32> to vector<1x64xf32>
    %c1_17 = arith.constant 1 : index
    %c0_18 = arith.constant 0 : index
    %58 = vector.load %arg5[%c1_17, %c0_18] : memref<8x64xf32, #tpu.memory_space<vmem>>, vector<1x64xf32>
    tpu.vector_store %arg5[%c1_17, %c0_18], %57 {strides = array<i32>} : memref<8x64xf32, #tpu.memory_space<vmem>>, vector<1x64xf32>,
    %c2 = arith.constant 2 : index
    %c0_19 = arith.constant 0 : index
    %c0_20 = arith.constant 0 : index
    %59 = vector.load %arg1[%c2, %c0_19, %c0_20] : memref<8x2x1xf32, #tpu.memory_space<vmem>>, vector<1x2x1xf32>
    %60 = vector.shape_cast %59 : vector<1x2x1xf32> to vector<2x1xf32>
    %61 = vector.broadcast %60 : vector<2x1xf32> to vector<2x256xf32>
    %62 = vector.broadcast %0 : vector<1x256xf32> to vector<2x256xf32>
    %63 = arith.mulf %61, %62 : vector<2x256xf32>
    %64 = arith.addf %63, %4 : vector<2x256xf32>
    %cst_21 = arith.constant dense<0.000000e+00> : vector<2x256xf32>
    %65 = tpu.matmul %56, %1, %cst_21 {dimension_numbers = #tpu.dot_dimension_numbers<[1], [0], [0], [1], [0, 0, 1, 1], [], []>} : vector<2x64xf32>, vector<64x256xf32>, vector<2x256xf32> -> vector<2x256xf32>
    %66 = arith.addf %64, %65 : vector<2x256xf32>
    %67 = vector.extract_strided_slice %66 {offsets = [0, 0], sizes = [2, 192], strides = [1, 1]} : vector<2x256xf32> to vector<2x192xf32>
    %68 = arith.negf %67 : vector<2x192xf32>
    %69 = math.exp %68 : vector<2x192xf32>
    %cst_22 = arith.constant 1.000000e+00 : f32
    %70 = vector.broadcast %cst_22 : f32 to vector<2x192xf32>
    %71 = arith.addf %70, %69 : vector<2x192xf32>
    %72 = arith.divf %70, %71 : vector<2x192xf32>
    %73 = vector.extract_strided_slice %72 {offsets = [0, 0], sizes = [2, 64], strides = [1, 1]} : vector<2x192xf32> to vector<2x64xf32>
    %74 = vector.extract_strided_slice %72 {offsets = [0, 64], sizes = [2, 64], strides = [1, 1]} : vector<2x192xf32> to vector<2x64xf32>
    %75 = vector.extract_strided_slice %72 {offsets = [0, 128], sizes = [2, 64], strides = [1, 1]} : vector<2x192xf32> to vector<2x64xf32>
    %76 = vector.extract_strided_slice %66 {offsets = [0, 192], sizes = [2, 64], strides = [1, 1]} : vector<2x256xf32> to vector<2x64xf32>
    %77 = math.tanh %76 : vector<2x64xf32>
    %78 = arith.mulf %74, %54 : vector<2x64xf32>
    %79 = arith.mulf %73, %77 : vector<2x64xf32>
    %80 = arith.addf %78, %79 : vector<2x64xf32>
    %81 = math.tanh %80 : vector<2x64xf32>
    %82 = arith.mulf %75, %81 : vector<2x64xf32>
    %83 = vector.extract_strided_slice %82 {offsets = [1, 0], sizes = [1, 64], strides = [1, 1]} : vector<2x64xf32> to vector<1x64xf32>
    %c2_23 = arith.constant 2 : index
    %c0_24 = arith.constant 0 : index
    %84 = vector.load %arg5[%c2_23, %c0_24] : memref<8x64xf32, #tpu.memory_space<vmem>>, vector<1x64xf32>
    tpu.vector_store %arg5[%c2_23, %c0_24], %83 {strides = array<i32>} : memref<8x64xf32, #tpu.memory_space<vmem>>, vector<1x64xf32>,
    %c3 = arith.constant 3 : index
    %c0_25 = arith.constant 0 : index
    %c0_26 = arith.constant 0 : index
    %85 = vector.load %arg1[%c3, %c0_25, %c0_26] : memref<8x2x1xf32, #tpu.memory_space<vmem>>, vector<1x2x1xf32>
    %86 = vector.shape_cast %85 : vector<1x2x1xf32> to vector<2x1xf32>
    %87 = vector.broadcast %86 : vector<2x1xf32> to vector<2x256xf32>
    %88 = vector.broadcast %0 : vector<1x256xf32> to vector<2x256xf32>
    %89 = arith.mulf %87, %88 : vector<2x256xf32>
    %90 = arith.addf %89, %4 : vector<2x256xf32>
    %cst_27 = arith.constant dense<0.000000e+00> : vector<2x256xf32>
    %91 = tpu.matmul %82, %1, %cst_27 {dimension_numbers = #tpu.dot_dimension_numbers<[1], [0], [0], [1], [0, 0, 1, 1], [], []>} : vector<2x64xf32>, vector<64x256xf32>, vector<2x256xf32> -> vector<2x256xf32>
    %92 = arith.addf %90, %91 : vector<2x256xf32>
    %93 = vector.extract_strided_slice %92 {offsets = [0, 0], sizes = [2, 192], strides = [1, 1]} : vector<2x256xf32> to vector<2x192xf32>
    %94 = arith.negf %93 : vector<2x192xf32>
    %95 = math.exp %94 : vector<2x192xf32>
    %cst_28 = arith.constant 1.000000e+00 : f32
    %96 = vector.broadcast %cst_28 : f32 to vector<2x192xf32>
    %97 = arith.addf %96, %95 : vector<2x192xf32>
    %98 = arith.divf %96, %97 : vector<2x192xf32>
    %99 = vector.extract_strided_slice %98 {offsets = [0, 0], sizes = [2, 64], strides = [1, 1]} : vector<2x192xf32> to vector<2x64xf32>
    %100 = vector.extract_strided_slice %98 {offsets = [0, 64], sizes = [2, 64], strides = [1, 1]} : vector<2x192xf32> to vector<2x64xf32>
    %101 = vector.extract_strided_slice %98 {offsets = [0, 128], sizes = [2, 64], strides = [1, 1]} : vector<2x192xf32> to vector<2x64xf32>
    %102 = vector.extract_strided_slice %92 {offsets = [0, 192], sizes = [2, 64], strides = [1, 1]} : vector<2x256xf32> to vector<2x64xf32>
    %103 = math.tanh %102 : vector<2x64xf32>
    %104 = arith.mulf %100, %80 : vector<2x64xf32>
    %105 = arith.mulf %99, %103 : vector<2x64xf32>
    %106 = arith.addf %104, %105 : vector<2x64xf32>
    %107 = math.tanh %106 : vector<2x64xf32>
    %108 = arith.mulf %101, %107 : vector<2x64xf32>
    %109 = vector.extract_strided_slice %108 {offsets = [1, 0], sizes = [1, 64], strides = [1, 1]} : vector<2x64xf32> to vector<1x64xf32>
    %c3_29 = arith.constant 3 : index
    %c0_30 = arith.constant 0 : index
    %110 = vector.load %arg5[%c3_29, %c0_30] : memref<8x64xf32, #tpu.memory_space<vmem>>, vector<1x64xf32>
    tpu.vector_store %arg5[%c3_29, %c0_30], %109 {strides = array<i32>} : memref<8x64xf32, #tpu.memory_space<vmem>>, vector<1x64xf32>,
    %c4 = arith.constant 4 : index
    %c0_31 = arith.constant 0 : index
    %c0_32 = arith.constant 0 : index
    %111 = vector.load %arg1[%c4, %c0_31, %c0_32] : memref<8x2x1xf32, #tpu.memory_space<vmem>>, vector<1x2x1xf32>
    %112 = vector.shape_cast %111 : vector<1x2x1xf32> to vector<2x1xf32>
    %113 = vector.broadcast %112 : vector<2x1xf32> to vector<2x256xf32>
    %114 = vector.broadcast %0 : vector<1x256xf32> to vector<2x256xf32>
    %115 = arith.mulf %113, %114 : vector<2x256xf32>
    %116 = arith.addf %115, %4 : vector<2x256xf32>
    %cst_33 = arith.constant dense<0.000000e+00> : vector<2x256xf32>
    %117 = tpu.matmul %108, %1, %cst_33 {dimension_numbers = #tpu.dot_dimension_numbers<[1], [0], [0], [1], [0, 0, 1, 1], [], []>} : vector<2x64xf32>, vector<64x256xf32>, vector<2x256xf32> -> vector<2x256xf32>
    %118 = arith.addf %116, %117 : vector<2x256xf32>
    %119 = vector.extract_strided_slice %118 {offsets = [0, 0], sizes = [2, 192], strides = [1, 1]} : vector<2x256xf32> to vector<2x192xf32>
    %120 = arith.negf %119 : vector<2x192xf32>
    %121 = math.exp %120 : vector<2x192xf32>
    %cst_34 = arith.constant 1.000000e+00 : f32
    %122 = vector.broadcast %cst_34 : f32 to vector<2x192xf32>
    %123 = arith.addf %122, %121 : vector<2x192xf32>
    %124 = arith.divf %122, %123 : vector<2x192xf32>
    %125 = vector.extract_strided_slice %124 {offsets = [0, 0], sizes = [2, 64], strides = [1, 1]} : vector<2x192xf32> to vector<2x64xf32>
    %126 = vector.extract_strided_slice %124 {offsets = [0, 64], sizes = [2, 64], strides = [1, 1]} : vector<2x192xf32> to vector<2x64xf32>
    %127 = vector.extract_strided_slice %124 {offsets = [0, 128], sizes = [2, 64], strides = [1, 1]} : vector<2x192xf32> to vector<2x64xf32>
    %128 = vector.extract_strided_slice %118 {offsets = [0, 192], sizes = [2, 64], strides = [1, 1]} : vector<2x256xf32> to vector<2x64xf32>
    %129 = math.tanh %128 : vector<2x64xf32>
    %130 = arith.mulf %126, %106 : vector<2x64xf32>
    %131 = arith.mulf %125, %129 : vector<2x64xf32>
    %132 = arith.addf %130, %131 : vector<2x64xf32>
    %133 = math.tanh %132 : vector<2x64xf32>
    %134 = arith.mulf %127, %133 : vector<2x64xf32>
    %135 = vector.extract_strided_slice %134 {offsets = [1, 0], sizes = [1, 64], strides = [1, 1]} : vector<2x64xf32> to vector<1x64xf32>
    %c4_35 = arith.constant 4 : index
    %c0_36 = arith.constant 0 : index
    %136 = vector.load %arg5[%c4_35, %c0_36] : memref<8x64xf32, #tpu.memory_space<vmem>>, vector<1x64xf32>
    tpu.vector_store %arg5[%c4_35, %c0_36], %135 {strides = array<i32>} : memref<8x64xf32, #tpu.memory_space<vmem>>, vector<1x64xf32>,
    %c5 = arith.constant 5 : index
    %c0_37 = arith.constant 0 : index
    %c0_38 = arith.constant 0 : index
    %137 = vector.load %arg1[%c5, %c0_37, %c0_38] : memref<8x2x1xf32, #tpu.memory_space<vmem>>, vector<1x2x1xf32>
    %138 = vector.shape_cast %137 : vector<1x2x1xf32> to vector<2x1xf32>
    %139 = vector.broadcast %138 : vector<2x1xf32> to vector<2x256xf32>
    %140 = vector.broadcast %0 : vector<1x256xf32> to vector<2x256xf32>
    %141 = arith.mulf %139, %140 : vector<2x256xf32>
    %142 = arith.addf %141, %4 : vector<2x256xf32>
    %cst_39 = arith.constant dense<0.000000e+00> : vector<2x256xf32>
    %143 = tpu.matmul %134, %1, %cst_39 {dimension_numbers = #tpu.dot_dimension_numbers<[1], [0], [0], [1], [0, 0, 1, 1], [], []>} : vector<2x64xf32>, vector<64x256xf32>, vector<2x256xf32> -> vector<2x256xf32>
    %144 = arith.addf %142, %143 : vector<2x256xf32>
    %145 = vector.extract_strided_slice %144 {offsets = [0, 0], sizes = [2, 192], strides = [1, 1]} : vector<2x256xf32> to vector<2x192xf32>
    %146 = arith.negf %145 : vector<2x192xf32>
    %147 = math.exp %146 : vector<2x192xf32>
    %cst_40 = arith.constant 1.000000e+00 : f32
    %148 = vector.broadcast %cst_40 : f32 to vector<2x192xf32>
    %149 = arith.addf %148, %147 : vector<2x192xf32>
    %150 = arith.divf %148, %149 : vector<2x192xf32>
    %151 = vector.extract_strided_slice %150 {offsets = [0, 0], sizes = [2, 64], strides = [1, 1]} : vector<2x192xf32> to vector<2x64xf32>
    %152 = vector.extract_strided_slice %150 {offsets = [0, 64], sizes = [2, 64], strides = [1, 1]} : vector<2x192xf32> to vector<2x64xf32>
    %153 = vector.extract_strided_slice %150 {offsets = [0, 128], sizes = [2, 64], strides = [1, 1]} : vector<2x192xf32> to vector<2x64xf32>
    %154 = vector.extract_strided_slice %144 {offsets = [0, 192], sizes = [2, 64], strides = [1, 1]} : vector<2x256xf32> to vector<2x64xf32>
    %155 = math.tanh %154 : vector<2x64xf32>
    %156 = arith.mulf %152, %132 : vector<2x64xf32>
    %157 = arith.mulf %151, %155 : vector<2x64xf32>
    %158 = arith.addf %156, %157 : vector<2x64xf32>
    %159 = math.tanh %158 : vector<2x64xf32>
    %160 = arith.mulf %153, %159 : vector<2x64xf32>
    %161 = vector.extract_strided_slice %160 {offsets = [1, 0], sizes = [1, 64], strides = [1, 1]} : vector<2x64xf32> to vector<1x64xf32>
    %c5_41 = arith.constant 5 : index
    %c0_42 = arith.constant 0 : index
    %162 = vector.load %arg5[%c5_41, %c0_42] : memref<8x64xf32, #tpu.memory_space<vmem>>, vector<1x64xf32>
    tpu.vector_store %arg5[%c5_41, %c0_42], %161 {strides = array<i32>} : memref<8x64xf32, #tpu.memory_space<vmem>>, vector<1x64xf32>,
    %c6 = arith.constant 6 : index
    %c0_43 = arith.constant 0 : index
    %c0_44 = arith.constant 0 : index
    %163 = vector.load %arg1[%c6, %c0_43, %c0_44] : memref<8x2x1xf32, #tpu.memory_space<vmem>>, vector<1x2x1xf32>
    %164 = vector.shape_cast %163 : vector<1x2x1xf32> to vector<2x1xf32>
    %165 = vector.broadcast %164 : vector<2x1xf32> to vector<2x256xf32>
    %166 = vector.broadcast %0 : vector<1x256xf32> to vector<2x256xf32>
    %167 = arith.mulf %165, %166 : vector<2x256xf32>
    %168 = arith.addf %167, %4 : vector<2x256xf32>
    %cst_45 = arith.constant dense<0.000000e+00> : vector<2x256xf32>
    %169 = tpu.matmul %160, %1, %cst_45 {dimension_numbers = #tpu.dot_dimension_numbers<[1], [0], [0], [1], [0, 0, 1, 1], [], []>} : vector<2x64xf32>, vector<64x256xf32>, vector<2x256xf32> -> vector<2x256xf32>
    %170 = arith.addf %168, %169 : vector<2x256xf32>
    %171 = vector.extract_strided_slice %170 {offsets = [0, 0], sizes = [2, 192], strides = [1, 1]} : vector<2x256xf32> to vector<2x192xf32>
    %172 = arith.negf %171 : vector<2x192xf32>
    %173 = math.exp %172 : vector<2x192xf32>
    %cst_46 = arith.constant 1.000000e+00 : f32
    %174 = vector.broadcast %cst_46 : f32 to vector<2x192xf32>
    %175 = arith.addf %174, %173 : vector<2x192xf32>
    %176 = arith.divf %174, %175 : vector<2x192xf32>
    %177 = vector.extract_strided_slice %176 {offsets = [0, 0], sizes = [2, 64], strides = [1, 1]} : vector<2x192xf32> to vector<2x64xf32>
    %178 = vector.extract_strided_slice %176 {offsets = [0, 64], sizes = [2, 64], strides = [1, 1]} : vector<2x192xf32> to vector<2x64xf32>
    %179 = vector.extract_strided_slice %176 {offsets = [0, 128], sizes = [2, 64], strides = [1, 1]} : vector<2x192xf32> to vector<2x64xf32>
    %180 = vector.extract_strided_slice %170 {offsets = [0, 192], sizes = [2, 64], strides = [1, 1]} : vector<2x256xf32> to vector<2x64xf32>
    %181 = math.tanh %180 : vector<2x64xf32>
    %182 = arith.mulf %178, %158 : vector<2x64xf32>
    %183 = arith.mulf %177, %181 : vector<2x64xf32>
    %184 = arith.addf %182, %183 : vector<2x64xf32>
    %185 = math.tanh %184 : vector<2x64xf32>
    %186 = arith.mulf %179, %185 : vector<2x64xf32>
    %187 = vector.extract_strided_slice %186 {offsets = [1, 0], sizes = [1, 64], strides = [1, 1]} : vector<2x64xf32> to vector<1x64xf32>
    %c6_47 = arith.constant 6 : index
    %c0_48 = arith.constant 0 : index
    %188 = vector.load %arg5[%c6_47, %c0_48] : memref<8x64xf32, #tpu.memory_space<vmem>>, vector<1x64xf32>
    tpu.vector_store %arg5[%c6_47, %c0_48], %187 {strides = array<i32>} : memref<8x64xf32, #tpu.memory_space<vmem>>, vector<1x64xf32>,
    %c7 = arith.constant 7 : index
    %c0_49 = arith.constant 0 : index
    %c0_50 = arith.constant 0 : index
    %189 = vector.load %arg1[%c7, %c0_49, %c0_50] : memref<8x2x1xf32, #tpu.memory_space<vmem>>, vector<1x2x1xf32>
    %190 = vector.shape_cast %189 : vector<1x2x1xf32> to vector<2x1xf32>
    %191 = vector.broadcast %190 : vector<2x1xf32> to vector<2x256xf32>
    %192 = vector.broadcast %0 : vector<1x256xf32> to vector<2x256xf32>
    %193 = arith.mulf %191, %192 : vector<2x256xf32>
    %194 = arith.addf %193, %4 : vector<2x256xf32>
    %cst_51 = arith.constant dense<0.000000e+00> : vector<2x256xf32>
    %195 = tpu.matmul %186, %1, %cst_51 {dimension_numbers = #tpu.dot_dimension_numbers<[1], [0], [0], [1], [0, 0, 1, 1], [], []>} : vector<2x64xf32>, vector<64x256xf32>, vector<2x256xf32> -> vector<2x256xf32>
    %196 = arith.addf %194, %195 : vector<2x256xf32>
    %197 = vector.extract_strided_slice %196 {offsets = [0, 0], sizes = [2, 192], strides = [1, 1]} : vector<2x256xf32> to vector<2x192xf32>
    %198 = arith.negf %197 : vector<2x192xf32>
    %199 = math.exp %198 : vector<2x192xf32>
    %cst_52 = arith.constant 1.000000e+00 : f32
    %200 = vector.broadcast %cst_52 : f32 to vector<2x192xf32>
    %201 = arith.addf %200, %199 : vector<2x192xf32>
    %202 = arith.divf %200, %201 : vector<2x192xf32>
    %203 = vector.extract_strided_slice %202 {offsets = [0, 0], sizes = [2, 64], strides = [1, 1]} : vector<2x192xf32> to vector<2x64xf32>
    %204 = vector.extract_strided_slice %202 {offsets = [0, 64], sizes = [2, 64], strides = [1, 1]} : vector<2x192xf32> to vector<2x64xf32>
    %205 = vector.extract_strided_slice %202 {offsets = [0, 128], sizes = [2, 64], strides = [1, 1]} : vector<2x192xf32> to vector<2x64xf32>
    %206 = vector.extract_strided_slice %196 {offsets = [0, 192], sizes = [2, 64], strides = [1, 1]} : vector<2x256xf32> to vector<2x64xf32>
    %207 = math.tanh %206 : vector<2x64xf32>
    %208 = arith.mulf %204, %184 : vector<2x64xf32>
    %209 = arith.mulf %203, %207 : vector<2x64xf32>
    %210 = arith.addf %208, %209 : vector<2x64xf32>
    %211 = math.tanh %210 : vector<2x64xf32>
    %212 = arith.mulf %205, %211 : vector<2x64xf32>
    %213 = vector.extract_strided_slice %212 {offsets = [1, 0], sizes = [1, 64], strides = [1, 1]} : vector<2x64xf32> to vector<1x64xf32>
    %c7_53 = arith.constant 7 : index
    %c0_54 = arith.constant 0 : index
    %214 = vector.load %arg5[%c7_53, %c0_54] : memref<8x64xf32, #tpu.memory_space<vmem>>, vector<1x64xf32>
    tpu.vector_store %arg5[%c7_53, %c0_54], %213 {strides = array<i32>} : memref<8x64xf32, #tpu.memory_space<vmem>>, vector<1x64xf32>,
    return
  }
  func.func @transform_0(%arg0: i32) -> (i32, i32, i32) {
    %c0_i32 = arith.constant 0 : i32
    %c0_i32_0 = arith.constant 0 : i32
    %c0_i32_1 = arith.constant 0 : i32
    %c0_i32_2 = arith.constant 0 : i32
    return %c0_i32, %c0_i32_0, %c0_i32_1 : i32, i32, i32
  }
  func.func @transform_1(%arg0: i32) -> (i32, i32) {
    %c0_i32 = arith.constant 0 : i32
    %c0_i32_0 = arith.constant 0 : i32
    %c0_i32_1 = arith.constant 0 : i32
    return %c0_i32, %c0_i32_0 : i32, i32
  }
  func.func @transform_2(%arg0: i32) -> (i32, i32) {
    %c0_i32 = arith.constant 0 : i32
    %c0_i32_0 = arith.constant 0 : i32
    %c0_i32_1 = arith.constant 0 : i32
    return %c0_i32, %c0_i32_0 : i32, i32
  }
  func.func @transform_3(%arg0: i32) -> (i32, i32) {
    %c0_i32 = arith.constant 0 : i32
    %c0_i32_0 = arith.constant 0 : i32
    %c0_i32_1 = arith.constant 0 : i32
    return %c0_i32, %c0_i32_0 : i32, i32
  }
  func.func @transform_4(%arg0: i32) -> (i32, i32) {
    %c0_i32 = arith.constant 0 : i32
    %c0_i32_0 = arith.constant 0 : i32
    %c0_i32_1 = arith.constant 0 : i32
    return %c0_i32, %c0_i32_0 : i32, i32
  }
}

</mosaic_0001>

<bundles_post_ra>
// kernel: tpu_custom_call.1
= control target key start
LH: loop header
LB: loop body
LE: loop exit
PB: predicated region body
PF: predicated region fallthrough
CT: control target
= control target key end

     0   :  { %9 = vsyncpa [#allocation3], 0  ;;  %s1600_s0 = inlined_call_operand.vmem [shape: f32[8,2,1], index: 0, kind: input, shape index: {}]   ;;  %s1601_s1 = inlined_call_operand.vmem [shape: f32[1,256], index: 1, kind: input, shape index: {}]   ;;  %s1602_s2 = inlined_call_operand.hbm [shape: f32[64,256], index: 2, kind: input, shape index: {}]   ;;  %s1603_s3 = inlined_call_operand.vmem [shape: f32[1,256], index: 3, kind: input, shape index: {}]   ;;  %s1604_s4 = inlined_call_operand.hbm [shape: f32[8,64], index: 4, kind: output, shape index: {}]  }
   0x1   :  { %10 = vsyncpa [#allocation4], 0  ;;  %s1342_s15 = smov [#allocation2]   ;;  %s1294_s19 = scalar_lea.hbm %s1602_s2, 2048 }
   0x2   :  { %s20_s16 = sshll.u32 %s1342_s15, 4  ;;  %p1295_p0 = scmp.ne.s32.totalorder %s1602_s2, %s1294_s19  ;;  %s21_s16 = int_to_ptr.vmem [resolvable:$true] %s20_s16 }
   0x3   :  { %p1298_p1 = scmp.lt.u32.totalorder %s1294_s19, %s1602_s2 }
   0x5   :  { %p1300_p2 = pnand %p1298_p1, %p1295_p0 }
   0x7   :  { %1303 = shalt.err (!%p1300_p2)
}
   0x8   :  { %s1304_s24 = scalar_lea.vmem %s21_s16, 2048  ;;  %p1309_p4 = scmp.lt.s32.totalorder %s21_s16, %s21_s16 }
   0x9   :  { %p1305_p3 = scmp.ne.s32.totalorder %s21_s16, %s1304_s24  ;;  %p1310_p5 = scmp.lt.s32.totalorder %s1304_s24, %s1304_s24 }
   0xb   :  { %p1311_p6 = por %p1310_p5, %p1309_p4 }
   0xd   :  { %p1312_p7 = pnand %p1311_p6, %p1305_p3 }
   0xf   :  { %1315 = shalt.err (!%p1312_p7)
}
  0x10   :  { %s1343_s25 = smov 256   ;;  %s1344_s26 = smov 16  }
  0x11   :  { %26 = dma.hbm_to_vmem [thread:$0]  %s1602_s2, 2048, %s21_s16, [#allocation3], %s1343_s25, %s1343_s25, %s1344_s26  }
  0x12   :  { %1338 = dma.done.wait [#allocation3], 2048  }
  0x13   :  { %1339 = vsyncadd [#allocation3], 4294965248  ;;  %v1345_v0 = vmov 0.0   ;;  %v1346_v1 = vmov 0   ;;  %v51_v2 = vlaneseq  ;;  %v34_v4 = vld [vmem:[#allocation2 + $0x8] sm:$0xff]  ;;  %v36_v5 = vld [vmem:[#allocation2 + $0x18] sm:$0xff] }
  0x14   :  { %150 = vmatprep.mubr.f32.mxu0 %v1345_v0  ;;  %1197 = vset.pattern.permute.xlu0 %v1346_v1  ;;  %v33_v6 = vld [vmem:[#allocation2] sm:$0xff]  ;;  %v1390_v7 = vpack.c.bf16 %v36_v5, %v34_v4  ;;  %v35_v8 = vld [vmem:[#allocation2 + $0x10] sm:$0xff]  ;;  %v38_v9 = vld [vmem:[#allocation2 + $0x28] sm:$0xff]  ;;  %s1347_s7 = smov 64   ;;  %vm189_vm0 = vcmask 517121   ;;  %vm82_vm1 = vcmask 523264  }
  0x15   :  { %269 = vmatprep.mubr.f32.mxu1 %v1345_v0  ;;  %v1388_v3 = vshrl.u32 %v51_v2, 7  ;;  %v40_v10 = vld [vmem:[#allocation2 + $0x38] sm:$0xff]  ;;  %v1392_v11 = vpack.c.bf16 %v35_v8, %v33_v6  ;;  %v37_v13 = vld [vmem:[#allocation2 + $0x20] sm:$0xff]  ;;  %v39_v14 = vld [vmem:[#allocation2 + $0x30] sm:$0xff] }
  0x16   :  { %v1394_v12 = vpack.c.bf16 %v40_v10, %v38_v9  ;;  %v42_v15 = vld [vmem:[#allocation2 + $0x48] sm:$0xff]  ;;  %1063 = vmatprep.subr.bf16.mxu0 %v1390_v7  ;;  %v44_v17 = vld [vmem:[#allocation2 + $0x58] sm:$0xff]  ;;  %1079 = vmatprep.subr.bf16.mxu1 %v1390_v7  ;;  %v1400_v18 = vpack.c.bf16 %v39_v14, %v37_v13  ;;  %v41_v19 = vld [vmem:[#allocation2 + $0x40] sm:$0xff] }
  0x17   :  { %v53_v16 = vsub.s32 0, %v1388_v3  ;;  %1065 = vmatpush1.bf16.msra.mxu0 %v1392_v11  ;;  %1081 = vmatpush1.bf16.msra.mxu1 %v1392_v11  ;;  %v1404_v20 = vpack.c.bf16 %v44_v17, %v42_v15  ;;  %v43_v21 = vld [vmem:[#allocation2 + $0x50] sm:$0xff]  ;;  %v61_v22 = vld [vmem:[%s1600_s0] sm:$0x3]  ;;  %v46_v24 = vld [vmem:[#allocation2 + $0x68] sm:$0xff]  ;;  %v57_v32 = vsub.s32 1, %v1388_v3 }
  0x18   :  { %1067 = vmatprep.subr.bf16.mxu0 %v1394_v12  ;;  %v32_v23 = vld [vmem:[%s1601_s1] sm:$0x3]  ;;  %1083 = vmatprep.subr.bf16.mxu1 %v1394_v12  ;;  %v48_v25 = vld [vmem:[#allocation2 + $0x78] sm:$0xff]  ;;  %v1416_v27 = vpack.c.bf16 %v43_v21, %v41_v19  ;;  %v47_v30 = vld [vmem:[#allocation2 + $0x70] sm:$0xff] }
  0x19   :  { %64 = vperm.xlu0 %1197, %v61_v22   ;;  %v1413_v26 = vrot.slane %v32_v23, %v53_v16  ;;  %v1420_v28 = vpack.c.bf16 %v48_v25, %v46_v24  ;;  %v45_v29 = vld [vmem:[#allocation2 + $0x60] sm:$0xff]  ;;  %v1444_v33 = vrot.slane %v32_v23, %v57_v32 }
  0x1a   :  { %v1424_v31 = vpack.c.bf16 %v47_v30, %v45_v29  ;;  %v49_v35 = vld [vmem:[%s1603_s3] sm:$0x3]  ;;  %v1034_v43 = vld [vmem:[%s1600_s0 + $0x2] sm:$0x3]  ;;  %v1038_v22 = vld [vmem:[%s1600_s0 + $0x4] sm:$0x3] }
  0x1b   :  { %1069 = vmatpush1.bf16.msra.mxu0 %v1400_v18  ;;  %1085 = vmatpush1.bf16.msra.mxu1 %v1400_v18  ;;  %v1450_v37 = vrot.slane %v49_v35, %v57_v32  ;;  %v1458_v45 = vrot.slane %v49_v35, %v53_v16 }
  0x1c   :  { %1071 = vmatprep.subr.bf16.mxu0 %v1404_v20  ;;  %1087 = vmatprep.subr.bf16.mxu1 %v1404_v20 }
  0x1f   :  { %1073 = vmatpush1.bf16.msra.mxu0 %v1416_v27  ;;  %1089 = vmatpush1.bf16.msra.mxu1 %v1416_v27 }
  0x20   :  { %1075 = vmatprep.subr.bf16.mxu0 %v1420_v28  ;;  %1091 = vmatprep.subr.bf16.mxu1 %v1420_v28 }
  0x23   :  { %1077 = vmatpush1.bf16.msra.mxu0 %v1424_v31  ;;  %1093 = vmatpush1.bf16.msra.mxu1 %v1424_v31 }
  0x24   :  { %1095 = vmatprep.subr.bf16.mxu0 %v1390_v7  ;;  %1111 = vmatprep.subr.bf16.mxu1 %v1390_v7 }
  0x26   :  { %151 = vmatmul.mubr.f32.vlgmr.msra.gmra.mrb[0].mxu0 %v1345_v0 }
  0x27   :  { %1097 = vmatpush1.bf16.msra.mxu0 %v1392_v11  ;;  %387 = vmatprep.mubr.f32.mxu0 %v1345_v0 }
  0x28   :  { %1099 = vmatprep.subr.bf16.mxu0 %v1394_v12 }
  0x2b   :  { %1101 = vmatpush1.bf16.msra.mxu0 %v1400_v18 }
  0x2c   :  { %1103 = vmatprep.subr.bf16.mxu0 %v1404_v20 }
  0x2f   :  { %1105 = vmatpush1.bf16.msra.mxu0 %v1416_v27 }
  0x30   :  { %1107 = vmatprep.subr.bf16.mxu0 %v1420_v28 }
  0x33   :  { %1109 = vmatpush1.bf16.msra.mxu0 %v1424_v31 }
  0x34   :  { %1127 = vmatprep.subr.bf16.mxu0 %v1390_v7 }
  0x98   :  { %v65_v34 = vpop.permute.xlu0 %64 }
  0x99   :  { %v79_v36 = vmul.f32 %v1444_v33, %v65_v34  ;;  %v78_v44 = vmul.f32 %v1413_v26, %v65_v34 }
  0x9b   :  { %v81_v38 = vadd.f32 %v79_v36, %v1450_v37  ;;  %v80_v46 = vadd.f32 %v78_v44, %v1458_v45 }
  0xf9   :  { %v152_v39 = vpop.f32.mrb[0].mxu0 }
  0xfa   :  { %v154_v40 = vpop.f32.mrb[1].mxu0  ;;  %v157_v47 = vadd.f32 %v152_v39, %v80_v46 }
  0xfb   :  { %v158_v41 = vadd.f32 %v154_v40, %v81_v38 }
  0xfc   :  { %v1032_v48 = vmul.f32 -1.442695, %v157_v47 }
  0xfd   :  { %1198 = vtanh.f32 %v158_v41  ;;  %v1033_v58 = vmul.f32 -1.442695, %v158_v41 }
  0xfe   :  { %1200 = vpow2.f32 %v1032_v48 }
 0x107   :  { %v1199_v42 = vpop.eup %1198 }
 0x108   :  { %174 = vrot.lane.b32.xlu0 %v1199_v42, %s1347_s7  ;;  %v1201_v49 = vpop.eup %1200 }
 0x109   :  { %v165_v50 = vadd.f32 1.0, %v1201_v49 }
 0x10b   :  { %1202 = vrcp.f32 %v165_v50 }
 0x10c   :  { %195 = vperm.xlu0 %1197, %v1034_v43  }
 0x115   :  { %v1203_v51 = vpop.eup %1202 }
 0x116   :  { %v172_v54 = vmul.f32 0.0, %v1203_v51 }
 0x17a   :  { %v175_v52 = vpop.permute.xlu0 %174 }
 0x17b   :  { %v177_v53 = vmul.f32 %v1203_v51, %v175_v52 }
 0x17d   :  { %179 = vrot.lane.b32.xlu1 %v177_v53, %s1347_s7 }
 0x18b   :  { %v196_v1 = vpop.permute.xlu0 %195 }
 0x18c   :  { %v199_v2 = vmul.f32 %v196_v1, %v1444_v33  ;;  %v198_v9 = vmul.f32 %v196_v1, %v1413_v26 }
 0x18e   :  { %v201_v4 = vadd.f32 %v199_v2, %v1450_v37  ;;  %v200_v10 = vadd.f32 %v198_v9, %v1458_v45 }
 0x1ef   :  { %v180_v55 = vpop.permute.xlu1 %179 }
 0x1f0   :  { %v182_v56 = vadd.f32 %v180_v55, %v172_v54 }
 0x1f2   :  { %1204 = vtanh.f32 %v182_v56 }
 0x1f3   :  { %1206 = vpow2.f32 %v1033_v58 }
 0x1fc   :  { %v1205_v57 = vpop.eup %1204 }
 0x1fd   :  { %185 = vrot.lane.b32.xlu1 %v1205_v57, %s1347_s7  ;;  %v1207_v59 = vpop.eup %1206 }
 0x1fe   :  { %v166_v60 = vadd.f32 1.0, %v1207_v59 }
 0x200   :  { %1208 = vrcp.f32 %v166_v60 }
 0x20a   :  { %v1209_v61 = vpop.eup %1208 }
 0x26f   :  { %v186_v62 = vpop.permute.xlu1 %185 }
 0x270   :  { %v188_v63 = vmul.f32 %v1209_v61, %v186_v62 }
 0x272   :  { %190 = vst.msk [vmem:[#allocation5 - $0x1] sm:$0x2] %vm189_vm0, %v188_v63  ;;  %1035 = vmatmul.mubr.msk.f32.vlgmr.msra.gmra.mrb[0].mxu1 %vm82_vm1, %v188_v63 }
 0x273   :  { %1113 = vmatpush1.bf16.msra.mxu1 %v1392_v11  ;;  %505 = vmatprep.mubr.f32.mxu1 %v1345_v0 }
 0x274   :  { %1115 = vmatprep.subr.bf16.mxu1 %v1394_v12 }
 0x277   :  { %1117 = vmatpush1.bf16.msra.mxu1 %v1400_v18 }
 0x278   :  { %1119 = vmatprep.subr.bf16.mxu1 %v1404_v20 }
 0x27b   :  { %1121 = vmatpush1.bf16.msra.mxu1 %v1416_v27 }
 0x27c   :  { %1123 = vmatprep.subr.bf16.mxu1 %v1420_v28 }
 0x27f   :  { %1125 = vmatpush1.bf16.msra.mxu1 %v1424_v31 }
 0x280   :  { %1143 = vmatprep.subr.bf16.mxu1 %v1390_v7 }
 0x345   :  { %v271_v3 = vpop.f32.mrb[0].mxu1 }
 0x346   :  { %v273_v5 = vpop.f32.mrb[1].mxu1  ;;  %v276_v13 = vadd.f32 %v271_v3, %v200_v10 }
 0x347   :  { %v277_v6 = vadd.f32 %v273_v5, %v201_v4 }
 0x348   :  { %v1036_v14 = vmul.f32 -1.442695, %v276_v13 }
 0x349   :  { %1210 = vtanh.f32 %v277_v6  ;;  %v1037_v30 = vmul.f32 -1.442695, %v277_v6 }
 0x34a   :  { %1212 = vpow2.f32 %v1036_v14 }
 0x353   :  { %v1211_v8 = vpop.eup %1210 }
 0x354   :  { %293 = vrot.lane.b32.xlu1 %v1211_v8, %s1347_s7  ;;  %v1213_v15 = vpop.eup %1212 }
 0x355   :  { %v284_v16 = vadd.f32 1.0, %v1213_v15 }
 0x357   :  { %1214 = vrcp.f32 %v284_v16 }
 0x361   :  { %v1215_v17 = vpop.eup %1214 }
 0x362   :  { %v291_v23 = vmul.f32 %v1215_v17, %v182_v56  ;;  %v1042_v56 = vld [vmem:[%s1600_s0 + $0x6] sm:$0x3] }
 0x3c6   :  { %v294_v19 = vpop.permute.xlu1 %293 }
 0x3c7   :  { %v296_v21 = vmul.f32 %v1215_v17, %v294_v19 }
 0x3c9   :  { %298 = vrot.lane.b32.xlu0 %v296_v21, %s1347_s7 }
 0x3cd   :  { %313 = vperm.xlu0 %1197, %v1038_v22  }
 0x43b   :  { %v299_v24 = vpop.permute.xlu0 %298 }
 0x43c   :  { %v301_v25 = vadd.f32 %v299_v24, %v291_v23  ;;  %v1046_v24 = vld [vmem:[%s1600_s0 + $0x8] sm:$0x3] }
 0x43e   :  { %1216 = vtanh.f32 %v301_v25 }
 0x43f   :  { %1218 = vpow2.f32 %v1037_v30 }
 0x448   :  { %v1217_v29 = vpop.eup %1216 }
 0x449   :  { %304 = vrot.lane.b32.xlu1 %v1217_v29, %s1347_s7  ;;  %v1219_v32 = vpop.eup %1218 }
 0x44a   :  { %v285_v34 = vadd.f32 1.0, %v1219_v32 }
 0x44c   :  { %1220 = vrcp.f32 %v285_v34  ;;  %v314_v39 = vpop.permute.xlu0 %313 }
 0x44d   :  { %v317_v40 = vmul.f32 %v314_v39, %v1444_v33  ;;  %v316_v47 = vmul.f32 %v314_v39, %v1413_v26 }
 0x44f   :  { %v319_v42 = vadd.f32 %v317_v40, %v1450_v37  ;;  %v318_v48 = vadd.f32 %v316_v47, %v1458_v45 }
 0x456   :  { %v1221_v35 = vpop.eup %1220 }
 0x4bb   :  { %v305_v36 = vpop.permute.xlu1 %304 }
 0x4bc   :  { %v307_v38 = vmul.f32 %v1221_v35, %v305_v36 }
 0x4be   :  { %308 = vst.msk [vmem:[#allocation5] sm:$0x2] %vm189_vm0, %v307_v38  ;;  %1039 = vmatmul.mubr.msk.f32.vlgmr.msra.gmra.mrb[2].mxu0 %vm82_vm1, %v307_v38 }
 0x4bf   :  { %1129 = vmatpush1.bf16.msra.mxu0 %v1392_v11  ;;  %623 = vmatprep.mubr.f32.mxu0 %v1345_v0 }
 0x4c0   :  { %1131 = vmatprep.subr.bf16.mxu0 %v1394_v12 }
 0x4c3   :  { %1133 = vmatpush1.bf16.msra.mxu0 %v1400_v18 }
 0x4c4   :  { %1135 = vmatprep.subr.bf16.mxu0 %v1404_v20 }
 0x4c7   :  { %1137 = vmatpush1.bf16.msra.mxu0 %v1416_v27 }
 0x4c8   :  { %1139 = vmatprep.subr.bf16.mxu0 %v1420_v28 }
 0x4cb   :  { %1141 = vmatpush1.bf16.msra.mxu0 %v1424_v31 }
 0x4cc   :  { %1159 = vmatprep.subr.bf16.mxu0 %v1390_v7 }
 0x591   :  { %v389_v41 = vpop.f32.mrb[2].mxu0 }
 0x592   :  { %v391_v43 = vpop.f32.mrb[3].mxu0  ;;  %v394_v49 = vadd.f32 %v389_v41, %v318_v48 }
 0x593   :  { %v395_v44 = vadd.f32 %v391_v43, %v319_v42 }
 0x594   :  { %v1040_v50 = vmul.f32 -1.442695, %v394_v49 }
 0x595   :  { %1222 = vtanh.f32 %v395_v44  ;;  %v1041_v61 = vmul.f32 -1.442695, %v395_v44 }
 0x596   :  { %1224 = vpow2.f32 %v1040_v50 }
 0x59f   :  { %v1223_v46 = vpop.eup %1222 }
 0x5a0   :  { %411 = vrot.lane.b32.xlu1 %v1223_v46, %s1347_s7  ;;  %v1225_v51 = vpop.eup %1224 }
 0x5a1   :  { %v402_v52 = vadd.f32 1.0, %v1225_v51 }
 0x5a3   :  { %1226 = vrcp.f32 %v402_v52 }
 0x5ad   :  { %v1227_v53 = vpop.eup %1226 }
 0x5ae   :  { %v409_v57 = vmul.f32 %v1227_v53, %v301_v25 }
 0x612   :  { %v412_v54 = vpop.permute.xlu1 %411 }
 0x613   :  { %v414_v55 = vmul.f32 %v1227_v53, %v412_v54 }
 0x615   :  { %416 = vrot.lane.b32.xlu0 %v414_v55, %s1347_s7 }
 0x619   :  { %431 = vperm.xlu0 %1197, %v1042_v56  }
 0x687   :  { %v417_v58 = vpop.permute.xlu0 %416 }
 0x688   :  { %v419_v59 = vadd.f32 %v417_v58, %v409_v57  ;;  %v1050_v58 = vld [vmem:[%s1600_s0 + $0xa] sm:$0x3] }
 0x68a   :  { %1228 = vtanh.f32 %v419_v59 }
 0x68b   :  { %1230 = vpow2.f32 %v1041_v61 }
 0x694   :  { %v1229_v60 = vpop.eup %1228 }
 0x695   :  { %422 = vrot.lane.b32.xlu1 %v1229_v60, %s1347_s7  ;;  %v1231_v62 = vpop.eup %1230 }
 0x696   :  { %v403_v63 = vadd.f32 1.0, %v1231_v62 }
 0x698   :  { %1232 = vrcp.f32 %v403_v63  ;;  %v432_v4 = vpop.permute.xlu0 %431 }
 0x699   :  { %v435_v5 = vmul.f32 %v432_v4, %v1444_v33  ;;  %v434_v14 = vmul.f32 %v432_v4, %v1413_v26 }
 0x69b   :  { %v437_v8 = vadd.f32 %v435_v5, %v1450_v37  ;;  %v436_v15 = vadd.f32 %v434_v14, %v1458_v45 }
 0x6a2   :  { %v1233_v1 = vpop.eup %1232 }
 0x707   :  { %v423_v2 = vpop.permute.xlu1 %422 }
 0x708   :  { %v425_v3 = vmul.f32 %v1233_v1, %v423_v2 }
 0x70a   :  { %426 = vst.msk [vmem:[#allocation5 + $0x1] sm:$0x2] %vm189_vm0, %v425_v3  ;;  %1043 = vmatmul.mubr.msk.f32.vlgmr.msra.gmra.mrb[2].mxu1 %vm82_vm1, %v425_v3 }
 0x70b   :  { %1145 = vmatpush1.bf16.msra.mxu1 %v1392_v11  ;;  %741 = vmatprep.mubr.f32.mxu1 %v1345_v0 }
 0x70c   :  { %1147 = vmatprep.subr.bf16.mxu1 %v1394_v12 }
 0x70f   :  { %1149 = vmatpush1.bf16.msra.mxu1 %v1400_v18 }
 0x710   :  { %1151 = vmatprep.subr.bf16.mxu1 %v1404_v20 }
 0x713   :  { %1153 = vmatpush1.bf16.msra.mxu1 %v1416_v27 }
 0x714   :  { %1155 = vmatprep.subr.bf16.mxu1 %v1420_v28 }
 0x717   :  { %1157 = vmatpush1.bf16.msra.mxu1 %v1424_v31 }
 0x718   :  { %1175 = vmatprep.subr.bf16.mxu1 %v1390_v7 }
 0x7dd   :  { %v507_v6 = vpop.f32.mrb[2].mxu1 }
 0x7de   :  { %v509_v9 = vpop.f32.mrb[3].mxu1  ;;  %v512_v16 = vadd.f32 %v507_v6, %v436_v15 }
 0x7df   :  { %v513_v10 = vadd.f32 %v509_v9, %v437_v8 }
 0x7e0   :  { %v1044_v17 = vmul.f32 -1.442695, %v512_v16 }
 0x7e1   :  { %1234 = vtanh.f32 %v513_v10  ;;  %v1045_v34 = vmul.f32 -1.442695, %v513_v10 }
 0x7e2   :  { %1236 = vpow2.f32 %v1044_v17  ;;  %v1054_v17 = vld [vmem:[%s1600_s0 + $0xc] sm:$0x3] }
 0x7eb   :  { %v1235_v13 = vpop.eup %1234 }
 0x7ec   :  { %529 = vrot.lane.b32.xlu1 %v1235_v13, %s1347_s7  ;;  %v1237_v7 = vpop.eup %1236 }
 0x7ed   :  { %v520_v19 = vadd.f32 1.0, %v1237_v7 }
 0x7ef   :  { %1238 = vrcp.f32 %v520_v19 }
 0x7f9   :  { %v1239_v21 = vpop.eup %1238 }
 0x7fa   :  { %v527_v25 = vmul.f32 %v1239_v21, %v419_v59 }
 0x85e   :  { %v530_v22 = vpop.permute.xlu1 %529 }
 0x85f   :  { %v532_v23 = vmul.f32 %v1239_v21, %v530_v22 }
 0x861   :  { %534 = vrot.lane.b32.xlu0 %v532_v23, %s1347_s7 }
 0x865   :  { %549 = vperm.xlu0 %1197, %v1046_v24  }
 0x8d3   :  { %v535_v29 = vpop.permute.xlu0 %534 }
 0x8d4   :  { %v537_v30 = vadd.f32 %v535_v29, %v527_v25 }
 0x8d6   :  { %1240 = vtanh.f32 %v537_v30 }
 0x8d7   :  { %1242 = vpow2.f32 %v1045_v34 }
 0x8e0   :  { %v1241_v32 = vpop.eup %1240 }
 0x8e1   :  { %540 = vrot.lane.b32.xlu1 %v1241_v32, %s1347_s7  ;;  %v1243_v35 = vpop.eup %1242 }
 0x8e2   :  { %v521_v36 = vadd.f32 1.0, %v1243_v35 }
 0x8e4   :  { %1244 = vrcp.f32 %v521_v36  ;;  %v550_v41 = vpop.permute.xlu0 %549 }
 0x8e5   :  { %v553_v42 = vmul.f32 %v550_v41, %v1444_v33  ;;  %v552_v49 = vmul.f32 %v550_v41, %v1413_v26 }
 0x8e7   :  { %v555_v44 = vadd.f32 %v553_v42, %v1450_v37  ;;  %v554_v50 = vadd.f32 %v552_v49, %v1458_v45 }
 0x8ee   :  { %v1245_v38 = vpop.eup %1244 }
 0x953   :  { %v541_v39 = vpop.permute.xlu1 %540 }
 0x954   :  { %v543_v40 = vmul.f32 %v1245_v38, %v541_v39 }
 0x956   :  { %544 = vst.msk [vmem:[#allocation5 + $0x2] sm:$0x2] %vm189_vm0, %v543_v40  ;;  %1047 = vmatmul.mubr.msk.f32.vlgmr.msra.gmra.mrb[4].mxu0 %vm82_vm1, %v543_v40 }
 0x957   :  { %1161 = vmatpush1.bf16.msra.mxu0 %v1392_v11  ;;  %859 = vmatprep.mubr.f32.mxu0 %v1345_v0 }
 0x958   :  { %1163 = vmatprep.subr.bf16.mxu0 %v1394_v12 }
 0x95b   :  { %1165 = vmatpush1.bf16.msra.mxu0 %v1400_v18 }
 0x95c   :  { %1167 = vmatprep.subr.bf16.mxu0 %v1404_v20 }
 0x95f   :  { %1169 = vmatpush1.bf16.msra.mxu0 %v1416_v27 }
 0x960   :  { %1171 = vmatprep.subr.bf16.mxu0 %v1420_v28 }
 0x963   :  { %1173 = vmatpush1.bf16.msra.mxu0 %v1424_v31 }
 0xa29   :  { %v625_v43 = vpop.f32.mrb[4].mxu0 }
 0xa2a   :  { %v627_v46 = vpop.f32.mrb[5].mxu0  ;;  %v630_v51 = vadd.f32 %v625_v43, %v554_v50 }
 0xa2b   :  { %v631_v47 = vadd.f32 %v627_v46, %v555_v44 }
 0xa2c   :  { %v1048_v52 = vmul.f32 -1.442695, %v630_v51 }
 0xa2d   :  { %1246 = vtanh.f32 %v631_v47  ;;  %v1049_v63 = vmul.f32 -1.442695, %v631_v47 }
 0xa2e   :  { %1248 = vpow2.f32 %v1048_v52  ;;  %v1058_v52 = vld [vmem:[%s1600_s0 + $0xe] sm:$0x3]  ;;  %s1348_s0 = smov [#allocation5]  }
 0xa2f   :  { %s1023_s21 = sshll.u32 %s1348_s0, 4  ;;  %s1024_s21 = int_to_ptr.vmem [resolvable:$true] %s1023_s21 }
 0xa30   :  { %s1316_s22 = scalar_lea.vmem %s1024_s21, 128  ;;  %p1321_p9 = scmp.lt.s32.totalorder %s1024_s21, %s1024_s21 }
 0xa31   :  { %p1317_p8 = scmp.ne.s32.totalorder %s1024_s21, %s1316_s22  ;;  %p1322_p10 = scmp.lt.s32.totalorder %s1316_s22, %s1316_s22 }
 0xa33   :  { %p1323_p11 = por %p1322_p10, %p1321_p9 }
 0xa35   :  { %p1324_p12 = pnand %p1323_p11, %p1317_p8 }
 0xa37   :  { %v1247_v48 = vpop.eup %1246 }
 0xa38   :  { %647 = vrot.lane.b32.xlu1 %v1247_v48, %s1347_s7  ;;  %v1249_v53 = vpop.eup %1248 }
 0xa39   :  { %v638_v54 = vadd.f32 1.0, %v1249_v53 }
 0xa3b   :  { %1250 = vrcp.f32 %v638_v54 }
 0xa45   :  { %v1251_v55 = vpop.eup %1250 }
 0xa46   :  { %v645_v59 = vmul.f32 %v1251_v55, %v537_v30 }
 0xaaa   :  { %v648_v56 = vpop.permute.xlu1 %647 }
 0xaab   :  { %v650_v57 = vmul.f32 %v1251_v55, %v648_v56 }
 0xaad   :  { %652 = vrot.lane.b32.xlu0 %v650_v57, %s1347_s7 }
 0xab1   :  { %667 = vperm.xlu0 %1197, %v1050_v58  }
 0xb1f   :  { %v653_v60 = vpop.permute.xlu0 %652 }
 0xb20   :  { %v655_v61 = vadd.f32 %v653_v60, %v645_v59 }
 0xb22   :  { %1252 = vtanh.f32 %v655_v61 }
 0xb23   :  { %1254 = vpow2.f32 %v1049_v63 }
 0xb2c   :  { %v1253_v62 = vpop.eup %1252 }
 0xb2d   :  { %658 = vrot.lane.b32.xlu1 %v1253_v62, %s1347_s7  ;;  %v1255_v1 = vpop.eup %1254 }
 0xb2e   :  { %v639_v2 = vadd.f32 1.0, %v1255_v1 }
 0xb30   :  { %1256 = vrcp.f32 %v639_v2  ;;  %v668_v6 = vpop.permute.xlu0 %667 }
 0xb31   :  { %v671_v8 = vmul.f32 %v668_v6, %v1444_v33 }
 0xb3a   :  { %v1257_v3 = vpop.eup %1256 }
 0xb9f   :  { %v659_v4 = vpop.permute.xlu1 %658 }
 0xba0   :  { %v661_v5 = vmul.f32 %v1257_v3, %v659_v4 }
 0xba2   :  { %662 = vst.msk [vmem:[#allocation5 + $0x3] sm:$0x2] %vm189_vm0, %v661_v5  ;;  %1051 = vmatmul.mubr.msk.f32.vlgmr.msra.gmra.mrb[4].mxu1 %vm82_vm1, %v661_v5 }
 0xba3   :  { %1177 = vmatpush1.bf16.msra.mxu1 %v1392_v11  ;;  %977 = vmatprep.mubr.f32.mxu1 %v1345_v0  ;;  %v673_v11 = vadd.f32 %v671_v8, %v1450_v37 }
 0xba4   :  { %1179 = vmatprep.subr.bf16.mxu1 %v1394_v12 }
 0xba7   :  { %1181 = vmatpush1.bf16.msra.mxu1 %v1400_v18  ;;  %v670_v18 = vmul.f32 %v668_v6, %v1413_v26 }
 0xba8   :  { %1183 = vmatprep.subr.bf16.mxu1 %v1404_v20 }
 0xba9   :  { %v672_v20 = vadd.f32 %v670_v18, %v1458_v45 }
 0xbab   :  { %1185 = vmatpush1.bf16.msra.mxu1 %v1416_v27 }
 0xbac   :  { %1187 = vmatprep.subr.bf16.mxu1 %v1420_v28 }
 0xbaf   :  { %1189 = vmatpush1.bf16.msra.mxu1 %v1424_v31 }
 0xc75   :  { %v743_v9 = vpop.f32.mrb[4].mxu1 }
 0xc76   :  { %v745_v10 = vpop.f32.mrb[5].mxu1  ;;  %v748_v27 = vadd.f32 %v743_v9, %v672_v20 }
 0xc77   :  { %v749_v0 = vadd.f32 %v745_v10, %v673_v11 }
 0xc78   :  { %v1052_v28 = vmul.f32 -1.442695, %v748_v27 }
 0xc79   :  { %1258 = vtanh.f32 %v749_v0  ;;  %v1053_v23 = vmul.f32 -1.442695, %v749_v0 }
 0xc7a   :  { %1260 = vpow2.f32 %v1052_v28 }
 0xc83   :  { %v1259_v12 = vpop.eup %1258 }
 0xc84   :  { %765 = vrot.lane.b32.xlu1 %v1259_v12, %s1347_s7  ;;  %v1261_v31 = vpop.eup %1260 }
 0xc85   :  { %v756_v13 = vadd.f32 1.0, %v1261_v31 }
 0xc87   :  { %1262 = vrcp.f32 %v756_v13 }
 0xc91   :  { %v1263_v14 = vpop.eup %1262 }
 0xc92   :  { %v763_v7 = vmul.f32 %v1263_v14, %v655_v61 }
 0xcf6   :  { %v766_v15 = vpop.permute.xlu1 %765 }
 0xcf7   :  { %v768_v16 = vmul.f32 %v1263_v14, %v766_v15 }
 0xcf9   :  { %770 = vrot.lane.b32.xlu0 %v768_v16, %s1347_s7 }
 0xcfd   :  { %785 = vperm.xlu0 %1197, %v1054_v17  }
 0xd6b   :  { %v771_v19 = vpop.permute.xlu0 %770 }
 0xd6c   :  { %v773_v21 = vadd.f32 %v771_v19, %v763_v7 }
 0xd6e   :  { %1264 = vtanh.f32 %v773_v21 }
 0xd6f   :  { %1266 = vpow2.f32 %v1053_v23 }
 0xd78   :  { %v1265_v22 = vpop.eup %1264 }
 0xd79   :  { %776 = vrot.lane.b32.xlu1 %v1265_v22, %s1347_s7  ;;  %v1267_v24 = vpop.eup %1266 }
 0xd7a   :  { %v757_v25 = vadd.f32 1.0, %v1267_v24 }
 0xd7c   :  { %1268 = vrcp.f32 %v757_v25  ;;  %v786_v34 = vpop.permute.xlu0 %785 }
 0xd7d   :  { %v789_v35 = vmul.f32 %v786_v34, %v1444_v33  ;;  %v788_v42 = vmul.f32 %v786_v34, %v1413_v26 }
 0xd7f   :  { %v791_v38 = vadd.f32 %v789_v35, %v1450_v37  ;;  %v790_v43 = vadd.f32 %v788_v42, %v1458_v45 }
 0xd86   :  { %v1269_v29 = vpop.eup %1268 }
 0xdeb   :  { %v777_v30 = vpop.permute.xlu1 %776 }
 0xdec   :  { %v779_v32 = vmul.f32 %v1269_v29, %v777_v30 }
 0xdee   :  { %780 = vst.msk [vmem:[#allocation5 + $0x4] sm:$0x2] %vm189_vm0, %v779_v32  ;;  %1055 = vmatmul.mubr.msk.f32.vlgmr.msra.gmra.mrb[6].mxu0 %vm82_vm1, %v779_v32 }
 0xec1   :  { %v861_v36 = vpop.f32.mrb[6].mxu0 }
 0xec2   :  { %v863_v39 = vpop.f32.mrb[7].mxu0  ;;  %v866_v44 = vadd.f32 %v861_v36, %v790_v43 }
 0xec3   :  { %v867_v40 = vadd.f32 %v863_v39, %v791_v38 }
 0xec4   :  { %v1056_v46 = vmul.f32 -1.442695, %v866_v44 }
 0xec5   :  { %1270 = vtanh.f32 %v867_v40  ;;  %v1057_v57 = vmul.f32 -1.442695, %v867_v40 }
 0xec6   :  { %1272 = vpow2.f32 %v1056_v46 }
 0xecf   :  { %v1271_v41 = vpop.eup %1270 }
 0xed0   :  { %883 = vrot.lane.b32.xlu1 %v1271_v41, %s1347_s7  ;;  %v1273_v47 = vpop.eup %1272 }
 0xed1   :  { %v874_v48 = vadd.f32 1.0, %v1273_v47 }
 0xed3   :  { %1274 = vrcp.f32 %v874_v48 }
 0xedd   :  { %v1275_v49 = vpop.eup %1274 }
 0xede   :  { %v881_v53 = vmul.f32 %v1275_v49, %v773_v21 }
 0xf42   :  { %v884_v50 = vpop.permute.xlu1 %883 }
 0xf43   :  { %v886_v51 = vmul.f32 %v1275_v49, %v884_v50 }
 0xf45   :  { %888 = vrot.lane.b32.xlu0 %v886_v51, %s1347_s7 }
 0xf49   :  { %903 = vperm.xlu0 %1197, %v1058_v52  }
 0xfb7   :  { %v889_v54 = vpop.permute.xlu0 %888 }
 0xfb8   :  { %v891_v55 = vadd.f32 %v889_v54, %v881_v53 }
 0xfba   :  { %1276 = vtanh.f32 %v891_v55 }
 0xfbb   :  { %1278 = vpow2.f32 %v1057_v57 }
 0xfc4   :  { %v1277_v56 = vpop.eup %1276 }
 0xfc5   :  { %894 = vrot.lane.b32.xlu1 %v1277_v56, %s1347_s7  ;;  %v1279_v58 = vpop.eup %1278 }
 0xfc6   :  { %v875_v59 = vadd.f32 1.0, %v1279_v58 }
 0xfc8   :  { %1280 = vrcp.f32 %v875_v59  ;;  %v904_v63 = vpop.permute.xlu0 %903 }
 0xfc9   :  { %v907_v1 = vmul.f32 %v904_v63, %v1444_v33  ;;  %v906_v8 = vmul.f32 %v904_v63, %v1413_v26 }
 0xfcb   :  { %v909_v3 = vadd.f32 %v907_v1, %v1450_v37  ;;  %v908_v9 = vadd.f32 %v906_v8, %v1458_v45 }
 0xfd2   :  { %v1281_v60 = vpop.eup %1280 }
0x1037   :  { %v895_v61 = vpop.permute.xlu1 %894 }
0x1038   :  { %v897_v62 = vmul.f32 %v1281_v60, %v895_v61 }
0x103a   :  { %898 = vst.msk [vmem:[#allocation5 + $0x5] sm:$0x2] %vm189_vm0, %v897_v62  ;;  %1059 = vmatmul.mubr.msk.f32.vlgmr.msra.gmra.mrb[6].mxu1 %vm82_vm1, %v897_v62 }
0x110d   :  { %v979_v2 = vpop.f32.mrb[6].mxu1 }
0x110e   :  { %v981_v4 = vpop.f32.mrb[7].mxu1  ;;  %v984_v11 = vadd.f32 %v979_v2, %v908_v9 }
0x110f   :  { %v985_v5 = vadd.f32 %v981_v4, %v909_v3 }
0x1110   :  { %v1060_v10 = vmul.f32 -1.442695, %v984_v11 }
0x1111   :  { %1282 = vtanh.f32 %v985_v5  ;;  %v1061_v26 = vmul.f32 -1.442695, %v985_v5 }
0x1112   :  { %1284 = vpow2.f32 %v1060_v10 }
0x111b   :  { %v1283_v6 = vpop.eup %1282 }
0x111c   :  { %1001 = vrot.lane.b32.xlu1 %v1283_v6, %s1347_s7  ;;  %v1285_v0 = vpop.eup %1284 }
0x111d   :  { %v992_v12 = vadd.f32 1.0, %v1285_v0 }
0x111f   :  { %1286 = vrcp.f32 %v992_v12 }
0x1129   :  { %v1287_v33 = vpop.eup %1286 }
0x112a   :  { %v999_v37 = vmul.f32 %v1287_v33, %v891_v55 }
0x118e   :  { %v1002_v18 = vpop.permute.xlu1 %1001 }
0x118f   :  { %v1004_v20 = vmul.f32 %v1287_v33, %v1002_v18 }
0x1191   :  { %1006 = vrot.lane.b32.xlu0 %v1004_v20, %s1347_s7 }
0x1203   :  { %v1007_v27 = vpop.permute.xlu0 %1006 }
0x1204   :  { %v1009_v28 = vadd.f32 %v1007_v27, %v999_v37 }
0x1206   :  { %1288 = vtanh.f32 %v1009_v28 }
0x1207   :  { %1290 = vpow2.f32 %v1061_v26 }
0x1210   :  { %v1289_v31 = vpop.eup %1288 }
0x1211   :  { %1012 = vrot.lane.b32.xlu1 %v1289_v31, %s1347_s7  ;;  %v1291_v45 = vpop.eup %1290 }
0x1212   :  { %v993_v13 = vadd.f32 1.0, %v1291_v45 }
0x1214   :  { %1292 = vrcp.f32 %v993_v13 }
0x121e   :  { %v1293_v14 = vpop.eup %1292 }
0x1283   :  { %v1013_v15 = vpop.permute.xlu1 %1012 }
0x1284   :  { %v1015_v16 = vmul.f32 %v1293_v14, %v1013_v15 }
0x1286   :  { %1016 = vst.msk [vmem:[#allocation5 + $0x6] sm:$0x2] %vm189_vm0, %v1015_v16 }
0x1287   :  { %1327 = shalt.err (!%p1324_p12)
}
0x1288   :  { %s1328_s25 = scalar_lea.hbm %s1604_s4, 128 }
0x1289   :  { %p1329_p13 = scmp.ne.s32.totalorder %s1604_s4, %s1328_s25  ;;  %p1332_p0 = scmp.lt.u32.totalorder %s1328_s25, %s1604_s4 }
0x128b   :  { %p1334_p1 = pnand %p1332_p0, %p1329_p13 }
0x128d   :  { %1337 = shalt.err (!%p1334_p1)
}
0x128e   :  { %1026 = dma.vmem_to_hbm [thread:$0]  %s1024_s21, 128, %s1604_s4, [#allocation4]  }
0x128f   :  { %1340 = dma.done.wait [#allocation4], 128  }
0x1290   :  { %1341 = vsyncadd [#allocation4], 4294967168 }
0x1291   :  { %1030 = vsyncpa [#allocation3], 1 }
0x1292   :  { %1031 = vsyncpa [#allocation4], 1 }

</bundles_post_ra>
